<compile_context>
chip_gen: v7x
topology: tpu7x:2x2x1
jax: 0.10.0
libtpu: 0.0.40
codegen_flags: <defaults>
</compile_context>

<pallas_src>
import functools
import math

import jax
import jax.numpy as jnp
import numpy as np
from jax.experimental import pallas as pl
from jax.experimental.pallas import tpu as pltpu

_LANES = 128
_MAX_PACK_LANES = 1024   # cap on packed lane width L = lcm(D, 128)
_MAX_PACK_GROUP = 8      # cap on rows packed per lane-row (mul-add loop length)


def _round_up(x, m):
    return ((x + m - 1) // m) * m


def _cdiv(a, b):
    return -(-a // b)


# ----------------------------- kernels --------------------------------------

def _packed_kernel_nobias(t_ref, wrows_ref, o_ref, *, g):
    # t_ref: (TM, g)   wrows_ref: (g, L)   o_ref: (TM, L)
    # g broadcast-multiply-adds on the VPU; cos on the EUP (separate slot).
    # TODO(synk): on v7x, if the bundle shows VALU (not EUP) saturating, switch
    # this loop to jnp.dot((TM,g),(g,L)) on the MXU and re-verify f32 precision.
    acc = t_ref[:, 0:1] * wrows_ref[0:1, :]
    for j in range(1, g):
        acc = acc + t_ref[:, j:j + 1] * wrows_ref[j:j + 1, :]
    o_ref[...] = jnp.cos(acc).astype(o_ref.dtype)


def _packed_kernel_bias(t_ref, wrows_ref, bpk_ref, o_ref, *, g):
    acc = bpk_ref[...]                              # (1, L), broadcasts below
    for j in range(g):
        acc = acc + t_ref[:, j:j + 1] * wrows_ref[j:j + 1, :]
    o_ref[...] = jnp.cos(acc).astype(o_ref.dtype)


def _general_kernel_nobias(t_ref, w_ref, o_ref):
    # t_ref: (TM, 1)   w_ref: (1, D)   o_ref: (TM, D)
    o_ref[...] = jnp.cos(t_ref[...] * w_ref[...]).astype(o_ref.dtype)


def _general_kernel_bias(t_ref, w_ref, b_ref, o_ref):
    o_ref[...] = jnp.cos(t_ref[...] * w_ref[...] + b_ref[...]).astype(o_ref.dtype)


# ----------------------------- tiling helper ---------------------------------

def _choose_tm(n_rows, row_bytes, block_rows):
    """Row tile: as large as reasonable (multi-MiB) to amortize the ~0.35us/step
    pipeline overhead, but keep >=2 grid steps when there is enough work so the
    'parallel' row axis feeds both v7x TensorCores.  Small inputs use a single
    full-extent block (exempt from the (8,128) divisibility rule)."""
    if n_rows <= 16:
        return n_rows                                   # one full-extent block
    tm = max(16, min(block_rows, ((4 << 20) // max(row_bytes, 1)) // 16 * 16))
    if tm >= n_rows:
        if n_rows >= 2048:
            tm = _round_up(_cdiv(n_rows, 2), 16)        # 2 steps for megacore
        else:
            tm = n_rows                                 # single full-extent block
    return tm


# ----------------------------- wrapper ---------------------------------------

@functools.partial(jax.jit, static_argnames=("dimension", "out_dtype", "block_rows"))
def time_encode(t, w, b=None, *, dimension, out_dtype=jnp.float32, block_rows=4096):
    """Fourier time encoding cos(t * w + b).

    t: float array [..., 1]; w: [D] (or [D, 1]); b: optional [D] (None == zero
    bias, the module's init).  Returns [..., D] in `out_dtype`.
    """
    assert t.shape[-1] == 1, "TimeEncode expects a trailing singleton dim"
    lead_shape = t.shape[:-1]
    n = int(np.prod(lead_shape)) if lead_shape else 1
    out_itemsize = jnp.dtype(out_dtype).itemsize

    if n == 0:  # degenerate input: no grid to build
        return jnp.zeros((*lead_shape, dimension), dtype=out_dtype)

    t_flat = t.reshape(n).astype(jnp.float32)
    w_row = w.reshape(1, dimension).astype(jnp.float32)
    b_row = None if b is None else b.reshape(1, dimension).astype(jnp.float32)

    # Lane-dense packing: pack g = L/D consecutive output rows into one L-lane
    # row where L = lcm(D, 128), so every store is an unmasked full-lane vst.
    lane_width = dimension * _LANES // math.gcd(dimension, _LANES)   # lcm(D,128)
    g = lane_width // dimension
    use_packed = (g > 1 and lane_width <= _MAX_PACK_LANES and g <= _MAX_PACK_GROUP)

    if use_packed:
        np_rows = _cdiv(n, g)                      # packed output rows (exact)
        n_g = np_rows * g
        if n_g != n:                               # ragged tail: pad < g elems
            t_flat = jnp.pad(t_flat, (0, n_g - n))
        t2 = t_flat.reshape(np_rows, g)            # free view when n % g == 0

        # (g, L) packing weights: row j holds w at lanes [j*D, (j+1)*D).
        lane_blk = np.arange(lane_width, dtype=np.int32) // dimension
        sel = (lane_blk[None, :] == np.arange(g, dtype=np.int32)[:, None])
        sel = jnp.asarray(sel.astype(np.float32))          # compile-time const
        w_rows = sel * jnp.tile(w_row, (1, g))             # (g, L)

        tm = _choose_tm(np_rows, lane_width * out_itemsize, block_rows)
        grid = (_cdiv(np_rows, tm),)

        inputs = [t2, w_rows]
        in_specs = [
            pl.BlockSpec((tm, g), lambda i: (i, 0)),
            pl.BlockSpec((g, lane_width), lambda i: (0, 0)),
        ]
        kernel = functools.partial(_packed_kernel_nobias, g=g)
        if b_row is not None:
            b_pk = jnp.tile(b_row, (1, g))                  # (1, L)
            inputs.append(b_pk)
            in_specs.append(pl.BlockSpec((1, lane_width), lambda i: (0, 0)))
            kernel = functools.partial(_packed_kernel_bias, g=g)

        out_specs = pl.BlockSpec((tm, lane_width), lambda i: (i, 0))
        out_shape = jax.ShapeDtypeStruct((np_rows, lane_width), out_dtype)
        out_bytes = np_rows * lane_width * out_itemsize
        in_bytes = n_g * 4
    else:
        # General path: lane extent is D itself (full array extent); tile rows.
        # No padding and no epilogue slice: grid = cdiv, Pallas clips last block.
        t2 = t_flat.reshape(n, 1)
        tm = _choose_tm(n, dimension * out_itemsize, block_rows)
        grid = (_cdiv(n, tm),)

        inputs = [t2, w_row]
        in_specs = [
            pl.BlockSpec((tm, 1), lambda i: (i, 0)),
            pl.BlockSpec((1, dimension), lambda i: (0, 0)),
        ]
        kernel = _general_kernel_nobias
        if b_row is not None:
            inputs.append(b_row)
            in_specs.append(pl.BlockSpec((1, dimension), lambda i: (0, 0)))
            kernel = _general_kernel_bias

        out_specs = pl.BlockSpec((tm, dimension), lambda i: (i, 0))
        out_shape = jax.ShapeDtypeStruct((n, dimension), out_dtype)
        out_bytes = n * dimension * out_itemsize
        in_bytes = n * 4

    cost = pl.CostEstimate(
        flops=2 * n * dimension,                 # mul + add per output element
        transcendentals=n * dimension,           # one cos per element (EUP)
        bytes_accessed=out_bytes + in_bytes + dimension * 4,
    )

    out = pl.pallas_call(
        kernel,
        out_shape=out_shape,
        grid=grid,
        in_specs=in_specs,
        out_specs=out_specs,
        compiler_params=pltpu.CompilerParams(
            dimension_semantics=("parallel",),      # megacore-shard the row axis
            vmem_limit_bytes=32 * 1024 * 1024,      # safe on v5e/v6e/v7x
        ),
        cost_estimate=cost,
    )(*inputs)

    if use_packed:
        out = out.reshape(n_g, dimension)           # free contiguous view
        if n_g != n:                                # only when n % g != 0
            out = out[:n]
    return out.reshape(*lead_shape, dimension)


def make_time_encode_params(dimension):
    # Deterministic init, exactly as in the PyTorch __init__.
    w = (1.0 / 10 ** np.linspace(0, 9, dimension)).astype(np.float32)   # (D,)
    b = np.zeros((dimension,), dtype=np.float32)
    return jnp.asarray(w), jnp.asarray(b)


if __name__ == "__main__":
    key = jax.random.PRNGKey(0)

    # ---- main config: packed lane-dense path (D=32 -> L=128, g=4; n % g == 0,
    #      so there is no pad and no epilogue slice) ----
    dimension = 32
    batch, seq = 2, 8
    t = jax.random.uniform(key, (batch, seq, 1), dtype=jnp.float32) * 10.0
    w, b = make_time_encode_params(dimension)

    out = jax.block_until_ready(time_encode(t, w, None, dimension=dimension))
    ref = jnp.cos(t * w.reshape(1, 1, dimension))
    np.testing.assert_allclose(np.asarray(out), np.asarray(ref), rtol=1e-5, atol=1e-5)
    assert out.shape == (batch, seq, dimension)
    assert out.dtype == jnp.float32

    # ---- bias path (module keeps a trainable bias parameter) ----
    b_nz = jax.random.normal(jax.random.PRNGKey(1), (dimension,), dtype=jnp.float32)
    out_b = jax.block_until_ready(time_encode(t, w, b_nz, dimension=dimension))
    ref_b = jnp.cos(t * w.reshape(1, 1, dimension) + b_nz.reshape(1, 1, dimension))
    np.testing.assert_allclose(np.asarray(out_b), np.asarray(ref_b), rtol=1e-5, atol=1e-5)

    # ---- LCM-packed path (D=48 -> L=384, g=8) with a ragged row count (n=21) ----
    d2 = 48
    w2, _ = make_time_encode_params(d2)
    t_r = jax.random.uniform(jax.random.PRNGKey(2), (3, 7, 1), dtype=jnp.float32) * 10.0
    out2 = jax.block_until_ready(time_encode(t_r, w2, None, dimension=d2))
    ref2 = jnp.cos(t_r * w2.reshape(1, 1, d2))
    np.testing.assert_allclose(np.asarray(out2), np.asarray(ref2), rtol=1e-5, atol=1e-5)

    # ---- general path (D=256: already lane-dense, no packing needed) ----
    d3 = 256
    w3, _ = make_time_encode_params(d3)
    out3 = jax.block_until_ready(time_encode(t, w3, None, dimension=d3))
    ref3 = jnp.cos(t * w3.reshape(1, 1, d3))
    np.testing.assert_allclose(np.asarray(out3), np.asarray(ref3), rtol=1e-5, atol=1e-5)

    # ---- bf16 output (recommended when the consumer tolerates it) ----
    out_bf = jax.block_until_ready(
        time_encode(t, w, None, dimension=dimension, out_dtype=jnp.bfloat16))
    np.testing.assert_allclose(np.asarray(out_bf, dtype=np.float32), np.asarray(ref),
                               rtol=2e-2, atol=1e-2)

    print("KERNEL_OK")
</pallas_src>

<mosaic_0001>
module attributes {stable_mosaic.version = 11 : i64} {
  func.func @_packed_kernel_nobias(%arg0: i32, %arg1: memref<4x4xf32, #tpu.memory_space<vmem>>, %arg2: memref<4x128xf32, #tpu.memory_space<vmem>>, %arg3: memref<4x128xf32, #tpu.memory_space<vmem>>) attributes {dimension_semantics = [#tpu.dimension_semantics<parallel>], iteration_bounds = array<i64: 1>, scalar_prefetch = 0 : i64, scratch_operands = 0 : i64, tpu.core_type = #tpu.core_type<tc>, window_params = [{transform_indices = @transform_0, window_bounds = array<i64: 4, 4>}, {pipeline_mode = #tpu.pipeline_mode<synchronous>, transform_indices = @transform_1, window_bounds = array<i64: 4, 128>}, {transform_indices = @transform_2, window_bounds = array<i64: 4, 128>}]} {
    %c0 = arith.constant 0 : index
    %c0_0 = arith.constant 0 : index
    %0 = vector.load %arg1[%c0, %c0_0] : memref<4x4xf32, #tpu.memory_space<vmem>>, vector<4x1xf32>
    %c0_1 = arith.constant 0 : index
    %c0_2 = arith.constant 0 : index
    %1 = vector.load %arg2[%c0_1, %c0_2] : memref<4x128xf32, #tpu.memory_space<vmem>>, vector<1x128xf32>
    %2 = vector.broadcast %0 : vector<4x1xf32> to vector<4x128xf32>
    %3 = vector.broadcast %1 : vector<1x128xf32> to vector<4x128xf32>
    %4 = arith.mulf %2, %3 : vector<4x128xf32>
    %c0_3 = arith.constant 0 : index
    %c1 = arith.constant 1 : index
    %5 = vector.load %arg1[%c0_3, %c1] : memref<4x4xf32, #tpu.memory_space<vmem>>, vector<4x1xf32>
    %c1_4 = arith.constant 1 : index
    %c0_5 = arith.constant 0 : index
    %6 = vector.load %arg2[%c1_4, %c0_5] : memref<4x128xf32, #tpu.memory_space<vmem>>, vector<1x128xf32>
    %7 = vector.broadcast %5 : vector<4x1xf32> to vector<4x128xf32>
    %8 = vector.broadcast %6 : vector<1x128xf32> to vector<4x128xf32>
    %9 = arith.mulf %7, %8 : vector<4x128xf32>
    %10 = arith.addf %4, %9 : vector<4x128xf32>
    %c0_6 = arith.constant 0 : index
    %c2 = arith.constant 2 : index
    %11 = vector.load %arg1[%c0_6, %c2] : memref<4x4xf32, #tpu.memory_space<vmem>>, vector<4x1xf32>
    %c2_7 = arith.constant 2 : index
    %c0_8 = arith.constant 0 : index
    %12 = vector.load %arg2[%c2_7, %c0_8] : memref<4x128xf32, #tpu.memory_space<vmem>>, vector<1x128xf32>
    %13 = vector.broadcast %11 : vector<4x1xf32> to vector<4x128xf32>
    %14 = vector.broadcast %12 : vector<1x128xf32> to vector<4x128xf32>
    %15 = arith.mulf %13, %14 : vector<4x128xf32>
    %16 = arith.addf %10, %15 : vector<4x128xf32>
    %c0_9 = arith.constant 0 : index
    %c3 = arith.constant 3 : index
    %17 = vector.load %arg1[%c0_9, %c3] : memref<4x4xf32, #tpu.memory_space<vmem>>, vector<4x1xf32>
    %c3_10 = arith.constant 3 : index
    %c0_11 = arith.constant 0 : index
    %18 = vector.load %arg2[%c3_10, %c0_11] : memref<4x128xf32, #tpu.memory_space<vmem>>, vector<1x128xf32>
    %19 = vector.broadcast %17 : vector<4x1xf32> to vector<4x128xf32>
    %20 = vector.broadcast %18 : vector<1x128xf32> to vector<4x128xf32>
    %21 = arith.mulf %19, %20 : vector<4x128xf32>
    %22 = arith.addf %16, %21 : vector<4x128xf32>
    %23 = math.cos %22 : vector<4x128xf32>
    %c0_12 = arith.constant 0 : index
    %c0_13 = arith.constant 0 : index
    %24 = vector.load %arg3[%c0_12, %c0_13] : memref<4x128xf32, #tpu.memory_space<vmem>>, vector<4x128xf32>
    tpu.vector_store %arg3[%c0_12, %c0_13], %23 {strides = array<i32>} : memref<4x128xf32, #tpu.memory_space<vmem>>, vector<4x128xf32>,
    return
  }
  func.func @transform_0(%arg0: i32) -> (i32, i32) {
    %c0_i32 = arith.constant 0 : i32
    %c0_i32_0 = arith.constant 0 : i32
    return %arg0, %c0_i32 : i32, i32
  }
  func.func @transform_1(%arg0: i32) -> (i32, i32) {
    %c0_i32 = arith.constant 0 : i32
    %c0_i32_0 = arith.constant 0 : i32
    %c0_i32_1 = arith.constant 0 : i32
    return %c0_i32, %c0_i32_0 : i32, i32
  }
  func.func @transform_2(%arg0: i32) -> (i32, i32) {
    %c0_i32 = arith.constant 0 : i32
    %c0_i32_0 = arith.constant 0 : i32
    return %arg0, %c0_i32 : i32, i32
  }
}

</mosaic_0001>

<bundles_post_ra>
// kernel: time_encode.1
= control target key start
LH: loop header
LB: loop body
LE: loop exit
PB: predicated region body
PF: predicated region fallthrough
CT: control target
= control target key end

     0   :  { %v195_v0 = vmov 0   ;;  %v196_v2 = vmov 2   ;;  %v197_v3 = vmov 1   ;;  %v198_v4 = vmov 3   ;;  %s259_s0 = inlined_call_operand.vmem [shape: f32[4,4], index: 0, kind: input, shape index: {}]   ;;  %s260_s1 = inlined_call_operand.vmem [shape: f32[4,128], index: 1, kind: input, shape index: {}]   ;;  %s261_s2 = inlined_call_operand.vmem [shape: f32[4,128], index: 2, kind: output, shape index: {}]  }
   0x1   :  { %186 = vset.pattern.permute.xlu0 %v195_v0  ;;  %v11_v1 = vld [vmem:[%s259_s0] sm:$0xf]  ;;  %188 = vset.pattern.permute.xlu1 %v196_v2  ;;  %v199_v30 = vmov 683565275   ;;  %v200_v32 = vmov 2475754826  }
   0x2   :  { %15 = vperm.xlu0 %186, %v11_v1   ;;  %36 = vperm.xlu1 %188, %v11_v1   ;;  %v164_v7 = vld [vmem:[%s260_s1] ss:$0 sm:$0xff]  ;;  %v165_v8 = vld [vmem:[%s260_s1 + $0x1] ss:$0 sm:$0xff]  ;;  %v166_v9 = vld [vmem:[%s260_s1 + $0x2] ss:$0 sm:$0xff] }
   0x3   :  { %v167_v11 = vld [vmem:[%s260_s1 + $0x3] ss:$0 sm:$0xff]  ;;  %v201_v35 = vmov 2131351028   ;;  %v202_v38 = vmov 2102212464  }
   0x4   :  { %v203_v41 = vmov 920167782   ;;  %v204_v44 = vmov 1326507024  }
   0x6   :  { %187 = vset.pattern.permute.xlu0 %v197_v3  ;;  %189 = vset.pattern.permute.xlu1 %v198_v4 }
   0x7   :  { %25 = vperm.xlu0 %187, %v11_v1   ;;  %47 = vperm.xlu1 %189, %v11_v1  }
   0xb   :  { %190 = vset.pattern.permute.xlu0 %v198_v4 }
  0x81   :  { %v16_v5 = vpop.permute.xlu0 %15  ;;  %v37_v6 = vpop.permute.xlu1 %36 }
  0x82   :  { %v22_v13 = vmul.f32 %v164_v7, %v16_v5  ;;  %v43_v15 = vmul.f32 %v166_v9, %v37_v6 }
  0x86   :  { %v26_v10 = vpop.permute.xlu0 %25  ;;  %v48_v12 = vpop.permute.xlu1 %47 }
  0x87   :  { %v32_v14 = vmul.f32 %v165_v8, %v26_v10  ;;  %v54_v17 = vmul.f32 %v167_v11, %v48_v12 }
  0x89   :  { %v33_v16 = vadd.f32 %v32_v14, %v22_v13 }
  0x8b   :  { %v44_v18 = vadd.f32 %v43_v15, %v33_v16 }
  0x8d   :  { %v235_v19 = vadd.f32 %v54_v17, %v44_v18 }
  0x8f   :  { %v59_v20 = vand.u32 2139095040, %v235_v19  ;;  %v56_v24 = vand.u32 2147483647, %v235_v19  ;;  %vm58_vm7 = vcmp.lt.s32.totalorder %v235_v19, 0  ;;  %vm148_vm12 = vweird.f32 %v235_v19 }
  0x91   :  { %v60_v21 = vshrl.u32 %v59_v20, 23  ;;  %v63_v27 = vand.u32 8388607, %v56_v24  ;;  %vm57_vm8 = vcmp.le.f32.partialorder %v56_v24, 0.7853982 }
  0x93   :  { %v168_v22 = vadd.s32 4294967169, %v60_v21  ;;  %v64_v46 = vor.u32 8388608, %v63_v27 }
  0x95   :  { %v66_v23 = vadd.s32 1, %v168_v22  ;;  %v104_v60 = vshll.u32 %v64_v46, 8 }
  0x97   :  { %vm67_vm0 = vcmp.gt.s32.totalorder %v66_v23, 0 }
  0x98   :  { %v68_v25 = vsel %vm67_vm0, %v66_v23, 0 }
  0x99   :  { %v70_v26 = vand.u32 31, %v68_v25  ;;  %v69_v29 = vshrl.u32 %v68_v25, 5 }
  0x9b   :  { %v71_v28 = vsub.s32 32, %v70_v26  ;;  %v73_v31 = vshll.u32 %v199_v30, %v70_v26  ;;  %v76_v33 = vshll.u32 %v200_v32, %v70_v26  ;;  %v79_v37 = vshll.u32 %v201_v35, %v70_v26 }
  0x9c   :  { %v82_v40 = vshll.u32 %v202_v38, %v70_v26  ;;  %v85_v43 = vshll.u32 %v203_v41, %v70_v26  ;;  %vm88_vm1 = vcmp.lt.s32.totalorder %v69_v29, 1  ;;  %vm91_vm2 = vcmp.lt.s32.totalorder %v69_v29, 4 }
  0x9d   :  { %v74_v34 = vshrl.u32 %v200_v32, %v71_v28  ;;  %v77_v36 = vshrl.u32 %v201_v35, %v71_v28  ;;  %v80_v39 = vshrl.u32 %v202_v38, %v71_v28  ;;  %v83_v42 = vshrl.u32 %v203_v41, %v71_v28 }
  0x9e   :  { %v86_v45 = vshrl.u32 %v204_v44, %v71_v28  ;;  %v72_v55 = vshrl.u32 %v199_v30, %v71_v28  ;;  %vm90_vm3 = vcmp.lt.s32.totalorder %v69_v29, 3  ;;  %vm89_vm4 = vcmp.lt.s32.totalorder %v69_v29, 2 }
  0x9f   :  { %v75_v47 = vor.u32 %v74_v34, %v73_v31  ;;  %v78_v48 = vor.u32 %v77_v36, %v76_v33  ;;  %v81_v49 = vor.u32 %v80_v39, %v79_v37  ;;  %v84_v50 = vor.u32 %v83_v42, %v82_v40 }
  0xa0   :  { %v87_v51 = vor.u32 %v86_v45, %v85_v43 }
  0xa1   :  { %v93_v52 = vsel %vm91_vm2, %v81_v49, 2102212464  ;;  %v96_v53 = vsel %vm88_vm1, %v75_v47, %v78_v48  ;;  %v100_v54 = vsel %vm88_vm1, %v78_v48, %v81_v49  ;;  %v97_v56 = vsel %vm91_vm2, %v84_v50, 920167782 }
  0xa2   :  { %v101_v57 = vsel %vm91_vm2, %v87_v51, 1326507024  ;;  %v98_v58 = vsel %vm90_vm3, %v81_v49, %v97_v56  ;;  %v92_v61 = vsel %vm88_vm1, %v72_v55, %v75_v47  ;;  %v94_v62 = vsel %vm90_vm3, %v78_v48, %v93_v52 }
  0xa3   :  { %v102_v59 = vsel %vm90_vm3, %v84_v50, %v101_v57  ;;  %v99_v63 = vsel %vm89_vm4, %v96_v53, %v98_v58  ;;  %v95_v5 = vsel %vm89_vm4, %v92_v61, %v94_v62 }
  0xa4   :  { %v103_v0 = vsel %vm89_vm4, %v100_v54, %v102_v59  ;;  %v244_v3 = vmul.u32.u64.low %v104_v60, %v99_v63  ;;  %v245_v4 = vmul.u32.u64.high %v104_v60, %v99_v63, %v244_v3  ;;  %v111_v7 = vmul.u32 %v104_v60, %v95_v5 }
  0xa5   :  { %v241_v1 = vmul.u32.u64.low %v104_v60, %v103_v0  ;;  %v242_v2 = vmul.u32.u64.high %v104_v60, %v103_v0, %v241_v1 }
  0xa6   :  { %v114_v6 = vadd.s32 1, %v245_v4 }
  0xa7   :  { %vm113_vm5 = vc.u32 %v242_v2, %v244_v3  ;;  %v112_v20 = vadd.s32 %v244_v3, %v242_v2 }
  0xa8   :  { %v115_v8 = vsel %vm113_vm5, %v114_v6, %v245_v4 }
  0xa9   :  { %v116_v9 = vadd.s32 %v115_v8, %v111_v7 }
  0xab   :  { %v117_v10 = vadd.s32 536870912, %v116_v9 }
  0xad   :  { %v118_v11 = vshrl.u32 %v117_v10, 30 }
  0xaf   :  { %v119_v12 = vshll.u32 %v118_v11, 30  ;;  %v142_v35 = vsub.s32 4, %v118_v11 }
  0xb1   :  { %v120_v13 = vsub.s32 %v116_v9, %v119_v12  ;;  %v143_v37 = vsel %vm58_vm7, %v142_v35, %v118_v11 }
  0xb2   :  { %v145_v38 = vsel %vm57_vm8, 0, %v143_v37 }
  0xb3   :  { %v122_v14 = vsub.s32 0, %v120_v13  ;;  %v149_v39 = vand.u32 3, %v145_v38 }
  0xb5   :  { %v169_v15 = vmin.u32 %v122_v14, %v120_v13  ;;  %vm154_vm9 = vcmp.eq.s32.totalorder %v149_v39, 2  ;;  %vm151_vm10 = vcmp.eq.s32.totalorder %v149_v39, 0  ;;  %vm150_vm11 = vcmp.lt.s32.totalorder %v149_v39, 2 }
  0xb7   :  { %v124_v16 = vclz %v169_v15 }
  0xb9   :  { %v170_v17 = vadd.s32 4294967294, %v124_v16 }
  0xbb   :  { %vm171_vm6 = vcmp.lt.s32.totalorder %v170_v17, 0 }
  0xbc   :  { %v127_v18 = vsel %vm171_vm6, 0, %v170_v17 }
  0xbd   :  { %v128_v21 = vsub.s32 32, %v127_v18  ;;  %v132_v22 = vsub.s32 4294967266, %v127_v18  ;;  %v129_v23 = vshll.u32 %v120_v13, %v127_v18 }
  0xbf   :  { %v130_v25 = vshrl.u32 %v112_v20, %v128_v21  ;;  %v133_v26 = vadd.s32 127, %v132_v22 }
  0xc1   :  { %v131_v27 = vor.u32 %v130_v25, %v129_v23  ;;  %v134_v28 = vshll.u32 %v133_v26, 23 }
  0xc3   :  { %v135_v29 = vor.u32 4788187, %v134_v28  ;;  %v138_v31 = vcvt.s32.f32 %v131_v27 }
  0xc5   :  { %v136_v30 = vand.u32 2147483647, %v135_v29 }
  0xc7   :  { %v139_v32 = vmul.f32 %v138_v31, %v136_v30 }
  0xc9   :  { %v140_v33 = vxor.u32 2147483648, %v139_v32 }
  0xcb   :  { %v141_v34 = vsel %vm58_vm7, %v140_v33, %v139_v32 }
  0xcc   :  { %v144_v36 = vsel %vm57_vm8, %v235_v19, %v141_v34 }
  0xcd   :  { %191 = vcosq.f32 %v144_v36 }
  0xce   :  { %193 = vsinq.f32 %v144_v36 }
  0xd7   :  { %v192_v40 = vpop.eup %191 }
  0xd8   :  { %v194_v41 = vpop.eup %193  ;;  %v155_v42 = vxor.u32 2147483648, %v192_v40 }
  0xd9   :  { %v152_v43 = vxor.u32 2147483648, %v194_v41 }
  0xda   :  { %v156_v44 = vsel %vm154_vm9, %v155_v42, %v194_v41 }
  0xdb   :  { %v153_v45 = vsel %vm151_vm10, %v192_v40, %v152_v43 }
  0xdc   :  { %v157_v24 = vsel %vm150_vm11, %v153_v45, %v156_v44 }
  0xdd   :  { %v158_v46 = vsel %vm148_vm12, nan, %v157_v24 }
  0xde   :  { %159 = vst [vmem:[%s261_s2] sm:$0xf] %v158_v46 }

</bundles_post_ra>
